<compile_context>
chip_gen: v7x
topology: tpu7x:2x2x1
jax: 0.10.0
libtpu: 0.0.40
codegen_flags: <defaults>
</compile_context>

<pallas_src>
import functools
import math

import jax
import jax.numpy as jnp
from jax import lax
from jax.experimental import pallas as pl
from jax.experimental.pallas import tpu as pltpu

# ---- ArcMarginLoss / FocalLoss constants (from the module __init__) ----
S = 32.0
M = 0.4
WAYS = 10
COS_M = math.cos(M)
SIN_M = math.sin(M)
TH = math.cos(math.pi - M)
MM = math.sin(math.pi - M) * M
ARC_EPS = 1e-06          # ArcMarginLoss.eps
CE_EPS = 1e-10           # FocalLoss.eps (added to logits)
GAMMA = 2                # FocalLoss.gamma
NORM_EPS = 1e-12         # F.normalize default eps


def _row_losses(x, w_t, labels):
    """Per-row (logsumexp - target_logit) of the arc-margin logits. Returns (rows, 1) f32.

    x:      (rows, D)   f32
    w_t:    (D, WAYS)   f32  (pre-transposed classifier weight)
    labels: (rows, 1)   int32
    """
    # F.normalize(v) = v / max(||v||, eps) == v * rsqrt(max(||v||^2, eps^2))
    x_n = x * lax.rsqrt(
        jnp.maximum(jnp.sum(x * x, axis=-1, keepdims=True), NORM_EPS * NORM_EPS))
    w_n = w_t * lax.rsqrt(
        jnp.maximum(jnp.sum(w_t * w_t, axis=0, keepdims=True), NORM_EPS * NORM_EPS))

    # Plain (rows, D) @ (D, WAYS) -> MXU, rhs contracting dim is already leading.
    # TODO(synk): for large D on v6e/v7x, cast x_n/w_n to bf16 here (keep f32 accumulate).
    cos = jnp.dot(x_n, w_n, preferred_element_type=jnp.float32)   # (rows, WAYS)

    # ArcMargin adjustment (easy_margin=False)
    sine = jnp.sqrt(1.0 - cos * cos + ARC_EPS)
    cos_phi = cos * COS_M - sine * SIN_M
    cos_phi = jnp.where(cos > TH, cos_phi, cos - MM)

    one_hot = (lax.broadcasted_iota(jnp.int32, cos.shape, 1)
               == labels).astype(jnp.float32)                     # (rows, WAYS)
    logits = (one_hot * cos_phi + (1.0 - one_hot) * cos) * S + CE_EPS

    # CrossEntropy per row: logsumexp(logits) - logits[label]
    mmax = jnp.max(logits, axis=-1, keepdims=True)
    lse = mmax + jnp.log(jnp.sum(jnp.exp(logits - mmax), axis=-1, keepdims=True))
    tgt = jnp.sum(one_hot * logits, axis=-1, keepdims=True)
    return lse - tgt                                              # (rows, 1)


def _focal(ce):
    p = jnp.exp(-ce)
    return (1.0 - p) ** GAMMA * ce


# ---------------- gridless single-block kernel (small B) ----------------
def _fused_kernel(x_ref, wt_ref, label_ref, out_ref):
    losses = _row_losses(x_ref[...], wt_ref[...], label_ref[...])
    ce = jnp.sum(losses) / losses.shape[0]       # mean over batch
    out_ref[0, 0] = _focal(ce)                   # scalar -> SMEM


# ---------------- batch-tiled kernel (large B, pipelined over B) ----------------
def _tiled_kernel(x_ref, wt_ref, label_ref, out_ref, acc_ref, *, actual_b, tb):
    step = pl.program_id(0)

    @pl.when(step == 0)
    def _():
        acc_ref[0, 0] = jnp.float32(0.0)

    losses = _row_losses(x_ref[...], wt_ref[...], label_ref[...])       # (tb, 1)
    row = step * tb + lax.broadcasted_iota(jnp.int32, losses.shape, 0)  # global row id
    losses = jnp.where(row < actual_b, losses, 0.0)                     # mask padded rows
    acc_ref[0, 0] += jnp.sum(losses)

    @pl.when(step == pl.num_programs(0) - 1)
    def _():
        ce = acc_ref[0, 0] * (1.0 / actual_b)
        out_ref[0, 0] = _focal(ce)


def arc_margin_loss(x, w, labels, *, block_b=256):
    """Forward of ArcMarginLoss(cosine(x, w), labels). Returns a scalar f32 loss.

    block_b: batch tile size for the pipelined path. Size it for the VMEM budget
    (keep 2 * block_b * D * 4B well under the scoped limit; v7x has only 64 MiB).
    """
    B, D = x.shape
    assert w.shape == (WAYS, D)
    x = x.astype(jnp.float32)
    w_t = jnp.transpose(w).astype(jnp.float32)          # (D, WAYS): contracting dim first
    labels2d = labels.reshape(B, 1).astype(jnp.int32)

    if B <= block_b:
        # Tiny problem: one gridless block, everything VMEM-resident, scalar out in SMEM.
        out = pl.pallas_call(
            _fused_kernel,
            out_shape=jax.ShapeDtypeStruct((1, 1), jnp.float32),
            in_specs=[
                pl.BlockSpec(memory_space=pltpu.MemorySpace.VMEM),
                pl.BlockSpec(memory_space=pltpu.MemorySpace.VMEM),
                pl.BlockSpec(memory_space=pltpu.MemorySpace.VMEM),
            ],
            out_specs=pl.BlockSpec(memory_space=pltpu.MemorySpace.SMEM),
        )(x, w_t, labels2d)
        return out[0, 0]

    # Batch-tiled, pipelined path (BlockSpec double-buffers x/labels over HBM->VMEM DMA).
    tb = block_b
    num_tiles = (B + tb - 1) // tb
    pad = num_tiles * tb - B
    if pad:
        x = jnp.pad(x, ((0, pad), (0, 0)))
        labels2d = jnp.pad(labels2d, ((0, pad), (0, 0)))

    kernel = functools.partial(_tiled_kernel, actual_b=B, tb=tb)
    # TODO(synk): v7x 2-TC variant: emit per-tile partial CE sums with
    # dimension_semantics=("parallel",) and reduce + focal-transform in the wrapper.
    out = pl.pallas_call(
        kernel,
        out_shape=jax.ShapeDtypeStruct((1, 1), jnp.float32),
        grid=(num_tiles,),
        in_specs=[
            pl.BlockSpec((tb, D), lambda i: (i, 0)),
            pl.BlockSpec((D, WAYS), lambda i: (0, 0)),
            pl.BlockSpec((tb, 1), lambda i: (i, 0)),
        ],
        out_specs=pl.BlockSpec((1, 1), lambda i: (0, 0),
                               memory_space=pltpu.MemorySpace.SMEM),
        scratch_shapes=[pltpu.SMEM((1, 1), jnp.float32)],
        compiler_params=pltpu.CompilerParams(
            dimension_semantics=("arbitrary",)),
    )(x, w_t, labels2d)
    return out[0, 0]

# TODO(synk): for training, wrap arc_margin_loss in jax.custom_vjp with a fused backward
# kernel; jax.grad does not differentiate through pallas_call automatically.


def _reference(x, w, labels):
    # Pure-JAX mirror of the PyTorch forward, for a correctness check.
    xn = x / jnp.maximum(jnp.linalg.norm(x, axis=1, keepdims=True), NORM_EPS)
    wn = w / jnp.maximum(jnp.linalg.norm(w, axis=1, keepdims=True), NORM_EPS)
    cos = xn @ wn.T
    sine = jnp.sqrt(1.0 - cos ** 2 + ARC_EPS)
    cos_phi = cos * COS_M - sine * SIN_M
    cos_phi = jnp.where(cos > TH, cos_phi, cos - MM)
    oh = jax.nn.one_hot(labels, WAYS, dtype=jnp.float32)
    logits = (oh * cos_phi + (1.0 - oh) * cos) * S + CE_EPS
    lse = jax.scipy.special.logsumexp(logits, axis=-1)
    ce = jnp.mean(lse - jnp.sum(oh * logits, axis=-1))
    p = jnp.exp(-ce)
    return (1.0 - p) ** GAMMA * ce


if __name__ == "__main__":
    key = jax.random.PRNGKey(0)
    kx, kw, kl = jax.random.split(key, 3)

    # Small shapes implied by the module: batch of feature vectors, (ways=10, D) weight.
    B, D = 8, 32
    x = jax.random.normal(kx, (B, D), dtype=jnp.float32)
    w = jax.random.normal(kw, (WAYS, D), dtype=jnp.float32)
    labels = jax.random.randint(kl, (B,), 0, WAYS, dtype=jnp.int32)

    # 1) gridless fused path
    loss = arc_margin_loss(x, w, labels)
    jax.block_until_ready(loss)
    ref = _reference(x, w, labels)
    assert jnp.allclose(loss, ref, rtol=1e-4, atol=1e-4), (loss, ref)

    # 2) batch-tiled pipelined path (still small: B=64, tile=16 -> grid of 4)
    kx2, kl2 = jax.random.split(kx)
    B2 = 64
    x2 = jax.random.normal(kx2, (B2, D), dtype=jnp.float32)
    labels2 = jax.random.randint(kl2, (B2,), 0, WAYS, dtype=jnp.int32)
    loss2 = arc_margin_loss(x2, w, labels2, block_b=16)
    jax.block_until_ready(loss2)
    ref2 = _reference(x2, w, labels2)
    assert jnp.allclose(loss2, ref2, rtol=1e-4, atol=1e-4), (loss2, ref2)

    print("KERNEL_OK")
</pallas_src>

<mosaic_0001>
module attributes {stable_mosaic.version = 11 : i64} {
  func.func @_fused_kernel(%arg0: memref<8x32xf32, #tpu.memory_space<vmem>>, %arg1: memref<32x10xf32, #tpu.memory_space<vmem>>, %arg2: memref<8x1xi32, #tpu.memory_space<vmem>>, %arg3: memref<1x1xf32, #tpu.memory_space<smem>>) attributes {dimension_semantics = [], scalar_prefetch = 0 : i64, scratch_operands = 0 : i64, tpu.core_type = #tpu.core_type<tc>} {
    %c0 = arith.constant 0 : index
    %c0_0 = arith.constant 0 : index
    %0 = vector.load %arg0[%c0, %c0_0] : memref<8x32xf32, #tpu.memory_space<vmem>>, vector<8x32xf32>
    %c0_1 = arith.constant 0 : index
    %c0_2 = arith.constant 0 : index
    %1 = vector.load %arg1[%c0_1, %c0_2] : memref<32x10xf32, #tpu.memory_space<vmem>>, vector<32x10xf32>
    %c0_3 = arith.constant 0 : index
    %c0_4 = arith.constant 0 : index
    %2 = vector.load %arg2[%c0_3, %c0_4] : memref<8x1xi32, #tpu.memory_space<vmem>>, vector<8x1xi32>
    %3 = arith.mulf %0, %0 : vector<8x32xf32>
    %cst = arith.constant dense<0.000000e+00> : vector<8xf32>
    %4 = vector.multi_reduction <add>, %3, %cst [1] : vector<8x32xf32> to vector<8xf32>
    %5 = vector.shape_cast %4 : vector<8xf32> to vector<8x1xf32>
    %cst_5 = arith.constant 1.000000e-24 : f32
    %6 = vector.broadcast %cst_5 : f32 to vector<8x1xf32>
    %7 = arith.maximumf %5, %6 : vector<8x1xf32>
    %8 = math.rsqrt %7 : vector<8x1xf32>
    %9 = vector.broadcast %8 : vector<8x1xf32> to vector<8x32xf32>
    %10 = arith.mulf %0, %9 : vector<8x32xf32>
    %11 = arith.mulf %1, %1 : vector<32x10xf32>
    %cst_6 = arith.constant dense<0.000000e+00> : vector<10xf32>
    %12 = vector.multi_reduction <add>, %11, %cst_6 [0] : vector<32x10xf32> to vector<10xf32>
    %13 = vector.shape_cast %12 : vector<10xf32> to vector<1x10xf32>
    %cst_7 = arith.constant 1.000000e-24 : f32
    %14 = vector.broadcast %cst_7 : f32 to vector<1x10xf32>
    %15 = arith.maximumf %13, %14 : vector<1x10xf32>
    %16 = math.rsqrt %15 : vector<1x10xf32>
    %17 = vector.broadcast %16 : vector<1x10xf32> to vector<32x10xf32>
    %18 = arith.mulf %1, %17 : vector<32x10xf32>
    %cst_8 = arith.constant dense<0.000000e+00> : vector<8x10xf32>
    %19 = tpu.matmul %10, %18, %cst_8 {dimension_numbers = #tpu.dot_dimension_numbers<[1], [0], [0], [1], [0, 0, 1, 1], [], []>} : vector<8x32xf32>, vector<32x10xf32>, vector<8x10xf32> -> vector<8x10xf32>
    %20 = arith.mulf %19, %19 : vector<8x10xf32>
    %cst_9 = arith.constant 1.000000e+00 : f32
    %21 = vector.broadcast %cst_9 : f32 to vector<8x10xf32>
    %22 = arith.subf %21, %20 : vector<8x10xf32>
    %cst_10 = arith.constant 9.99999997E-7 : f32
    %23 = vector.broadcast %cst_10 : f32 to vector<8x10xf32>
    %24 = arith.addf %22, %23 : vector<8x10xf32>
    %25 = math.sqrt %24 : vector<8x10xf32>
    %cst_11 = arith.constant 0.921060979 : f32
    %26 = vector.broadcast %cst_11 : f32 to vector<8x10xf32>
    %27 = arith.mulf %19, %26 : vector<8x10xf32>
    %cst_12 = arith.constant 0.389418334 : f32
    %28 = vector.broadcast %cst_12 : f32 to vector<8x10xf32>
    %29 = arith.mulf %25, %28 : vector<8x10xf32>
    %30 = arith.subf %27, %29 : vector<8x10xf32>
    %cst_13 = arith.constant -0.921060979 : f32
    %31 = vector.broadcast %cst_13 : f32 to vector<8x10xf32>
    %32 = arith.cmpf ogt, %19, %31 : vector<8x10xf32>
    %cst_14 = arith.constant 0.155767336 : f32
    %33 = vector.broadcast %cst_14 : f32 to vector<8x10xf32>
    %34 = arith.subf %19, %33 : vector<8x10xf32>
    %35 = arith.select %32, %30, %34 : vector<8x10xi1>, vector<8x10xf32>
    %36 = tpu.iota {dimensions = array<i32: 1>} : vector<8x10xi32>
    %37 = vector.broadcast %2 : vector<8x1xi32> to vector<8x10xi32>
    %38 = arith.cmpi eq, %36, %37 : vector<8x10xi32>
    %39 = arith.extui %38 : vector<8x10xi1> to vector<8x10xi32>
    %40 = arith.sitofp %39 : vector<8x10xi32> to vector<8x10xf32>
    %41 = arith.mulf %40, %35 : vector<8x10xf32>
    %cst_15 = arith.constant 1.000000e+00 : f32
    %42 = vector.broadcast %cst_15 : f32 to vector<8x10xf32>
    %43 = arith.subf %42, %40 : vector<8x10xf32>
    %44 = arith.mulf %43, %19 : vector<8x10xf32>
    %45 = arith.addf %41, %44 : vector<8x10xf32>
    %cst_16 = arith.constant 3.200000e+01 : f32
    %46 = vector.broadcast %cst_16 : f32 to vector<8x10xf32>
    %47 = arith.mulf %45, %46 : vector<8x10xf32>
    %cst_17 = arith.constant 1.000000e-10 : f32
    %48 = vector.broadcast %cst_17 : f32 to vector<8x10xf32>
    %49 = arith.addf %47, %48 : vector<8x10xf32>
    %cst_18 = arith.constant dense<0xFF800000> : vector<8xf32>
    %50 = vector.multi_reduction <maximumf>, %49, %cst_18 [1] : vector<8x10xf32> to vector<8xf32>
    %51 = vector.shape_cast %50 : vector<8xf32> to vector<8x1xf32>
    %52 = vector.broadcast %51 : vector<8x1xf32> to vector<8x10xf32>
    %53 = arith.subf %49, %52 : vector<8x10xf32>
    %54 = math.exp %53 : vector<8x10xf32>
    %cst_19 = arith.constant dense<0.000000e+00> : vector<8xf32>
    %55 = vector.multi_reduction <add>, %54, %cst_19 [1] : vector<8x10xf32> to vector<8xf32>
    %56 = vector.shape_cast %55 : vector<8xf32> to vector<8x1xf32>
    %57 = math.log %56 : vector<8x1xf32>
    %58 = arith.addf %51, %57 : vector<8x1xf32>
    %59 = arith.mulf %40, %49 : vector<8x10xf32>
    %cst_20 = arith.constant dense<0.000000e+00> : vector<8xf32>
    %60 = vector.multi_reduction <add>, %59, %cst_20 [1] : vector<8x10xf32> to vector<8xf32>
    %61 = vector.shape_cast %60 : vector<8xf32> to vector<8x1xf32>
    %62 = arith.subf %58, %61 : vector<8x1xf32>
    %63 = vector.shape_cast %62 : vector<8x1xf32> to vector<1x8x1xf32>
    %cst_21 = arith.constant dense<0.000000e+00> : vector<1xf32>
    %64 = vector.multi_reduction <add>, %63, %cst_21 [1, 2] : vector<1x8x1xf32> to vector<1xf32>
    %65 = vector.shape_cast %64 : vector<1xf32> to vector<1x1x1xf32>
    %66 = vector.extract %65[0, 0, 0] : f32 from vector<1x1x1xf32>
    %cst_22 = arith.constant 8.000000e+00 : f32
    %67 = arith.divf %66, %cst_22 : f32
    %cst_23 = arith.constant 0.000000e+00 : f32
    %68 = arith.subf %cst_23, %67 : f32
    %69 = math.exp %68 : f32
    %cst_24 = arith.constant 1.000000e+00 : f32
    %70 = arith.subf %cst_24, %69 : f32
    %71 = arith.mulf %70, %70 : f32
    %72 = arith.mulf %71, %67 : f32
    %c0_25 = arith.constant 0 : index
    %c0_26 = arith.constant 0 : index
    %73 = memref.load %arg3[%c0_25, %c0_26] : memref<1x1xf32, #tpu.memory_space<smem>>
    memref.store %72, %arg3[%c0_25, %c0_26] : memref<1x1xf32, #tpu.memory_space<smem>>
    return
  }
}

</mosaic_0001>

<bundles_post_ra>
// kernel: tpu_custom_call.1
= control target key start
LH: loop header
LB: loop body
LE: loop exit
PB: predicated region body
PF: predicated region fallthrough
CT: control target
= control target key end

     0   :  { %vm22_vm0 = vcmask 261120   ;;  %vm33_vm1 = vcmask 80896   ;;  %s333_s0 = inlined_call_operand.vmem [shape: f32[8,32], index: 0, kind: input, shape index: {}]   ;;  %s334_s1 = inlined_call_operand.vmem [shape: f32[32,10], index: 1, kind: input, shape index: {}]   ;;  %s335_s2 = inlined_call_operand.vmem [shape: s32[8,1], index: 2, kind: input, shape index: {}]   ;;  %s336_s3 = inlined_call_operand.hbm [shape: f32[1,1], index: 3, kind: output, shape index: {}]  }
   0x1   :  { %v15_v0 = vld [vmem:[%s333_s0] sm:$0xff]  ;;  %v17_v2 = vld [vmem:[%s334_s1 + $0x8] sm:$0xff]  ;;  %v18_v4 = vld [vmem:[%s334_s1 + $0x10] sm:$0xff] }
   0x2   :  { %v16_v1 = vld [vmem:[%s334_s1] sm:$0xff]  ;;  %v21_v3 = vmul.f32 %v15_v0, %v15_v0  ;;  %v19_v5 = vld [vmem:[%s334_s1 + $0x18] sm:$0xff]  ;;  %v30_v7 = vmul.f32 %v17_v2, %v17_v2 }
   0x3   :  { %v29_v6 = vmul.f32 %v16_v1, %v16_v1 }
   0x4   :  { %8 = vsyncpa [#allocation3], 0  ;;  %v31_v8 = vmul.f32 %v18_v4, %v18_v4  ;;  %v32_v9 = vmul.f32 %v19_v5, %v19_v5  ;;  %v23_v10 = vsel %vm22_vm0, %v21_v3, 0.0  ;;  %v35_v12 = vsel %vm33_vm1, %v30_v7, 0.0  ;;  %v20_v27 = vld [vmem:[%s335_s2] sm:$0xff]  ;;  %s257_s30 = scalar_lea.hbm %s336_s3, 16 }
   0x5   :  { %v34_v11 = vsel %vm33_vm1, %v29_v6, 0.0  ;;  %24 = vadd.xlane.f32.xlu0 %v23_v10  ;;  %v269_v24 = vmov 0.0|0.0   ;;  %vm270_vm2 = vmmov 0   ;;  %v271_v25 = vmov 0.0   ;;  %p258_p0 = scmp.ne.s32.totalorder %s336_s3, %s257_s30  ;;  %p261_p1 = scmp.lt.u32.totalorder %s257_s30, %s336_s3 }
   0x6   :  { %v36_v13 = vadd.f32 %v35_v12, %v34_v11  ;;  %v37_v14 = vsel %vm33_vm1, %v31_v8, 0.0  ;;  %v39_v15 = vsel %vm33_vm1, %v32_v9, 0.0  ;;  %229 = vmatprep.subr.bf16.mxu0 %v269_v24  ;;  %226 = vmatprep.mubr.msk.f32.mxu0 %vm270_vm2, %v271_v25  ;;  %v272_v29 = vmov 0  }
   0x7   :  { %244 = vset.pattern.permute.xlu0 %v272_v29  ;;  %v142_v45 = vlaneseq  ;;  %vm173_vm7 = vcmask 7168   ;;  %p263_p2 = pnand %p261_p1, %p258_p0 }
   0x8   :  { %v38_v16 = vadd.f32 %v37_v14, %v36_v13 }
   0x9   :  { %v143_v46 = vand.u32 127, %v142_v45 }
   0xa   :  { %v40_v17 = vadd.f32 %v39_v15, %v38_v16 }
   0xc   :  { %v41_v18 = vrot.slane %v40_v17, 4 }
   0xe   :  { %v42_v19 = vadd.f32 %v41_v18, %v40_v17 }
  0x10   :  { %v43_v20 = vrot.slane %v42_v19, 2 }
  0x12   :  { %v44_v21 = vadd.f32 %v43_v20, %v42_v19 }
  0x14   :  { %v45_v22 = vrot.slane %v44_v21, 1 }
  0x16   :  { %v46_v23 = vadd.f32 %v45_v22, %v44_v21 }
  0x18   :  { %v47_v26 = vmax.f32 %v46_v23, 1e-24 }
  0x1a   :  { %245 = vrsqrt.f32 %v47_v26 }
  0x1b   :  { %145 = vperm.xlu0 %244, %v20_v27  }
  0x24   :  { %v246_v28 = vpop.eup %245 }
  0x25   :  { %v49_v30 = vmul.f32 %v246_v28, %v16_v1  ;;  %v50_v31 = vmul.f32 %v246_v28, %v17_v2  ;;  %v51_v32 = vmul.f32 %v246_v28, %v18_v4  ;;  %v52_v33 = vmul.f32 %v246_v28, %v19_v5 }
  0x27   :  { %v230_v34 = vpack.c.bf16 %v50_v31, %v49_v30  ;;  %v233_v35 = vpack.c.bf16 %v52_v33, %v51_v32 }
  0x29   :  { %231 = vmatpush3.bf16.msra.mxu0 %v230_v34 }
  0x2a   :  { %232 = vmatprep.subr.bf16.mxu0 %v269_v24 }
  0x2d   :  { %234 = vmatpush3.bf16.msra.mxu0 %v233_v35 }
  0x92   :  { %v25_v36 = vpop.xlane.xlu0 %24 }
  0x93   :  { %v26_v37 = vmax.f32 %v25_v36, 1e-24 }
  0x95   :  { %247 = vrsqrt.f32 %v26_v37 }
  0x9a   :  { %v146_v47 = vpop.permute.xlu0 %145 }
  0x9b   :  { %vm147_vm3 = vcmp.eq.s32.totalorder %v143_v46, %v146_v47 }
  0x9c   :  { %v212_v51 = vsel %vm147_vm3, 1.0, %v271_v25 }
  0x9d   :  { %v151_v56 = vsub.f32 1.0, %v212_v51 }
  0x9f   :  { %v248_v38 = vpop.eup %247 }
  0xa0   :  { %v28_v39 = vmul.f32 %v248_v38, %v15_v0 }
  0xa2   :  { %227 = vmatmul.mubr.msk.f32.vlgmr.msra.gmra.mrb[0].mxu0 %vm22_vm0, %v28_v39 }
 0x175   :  { %v122_v40 = vpop.f32.mrb[0].mxu0 }
 0x176   :  { %v126_v41 = vmul.f32 %v122_v40, %v122_v40  ;;  %v228_v42 = vpop.f32.mrb[1].mxu0  ;;  %v136_v54 = vmul.f32 0.921061, %v122_v40  ;;  %v211_v58 = vadd.f32 -0.15576734, %v122_v40  ;;  %v152_v61 = vmul.f32 %v151_v56, %v122_v40 }
 0x177   :  { %vm139_vm6 = vcmp.gt.f32.partialorder %v122_v40, -0.921061 }
 0x178   :  { %v127_v43 = vsub.f32 1.0, %v126_v41 }
 0x17a   :  { %v128_v44 = vadd.f32 1e-06, %v127_v43 }
 0x17c   :  { %249 = vrsqrt.f32 %v128_v44  ;;  %vm131_vm4 = vcmp.eq.f32.partialorder %v128_v44, inf  ;;  %v134_v50 = vand.u32 2147483648, %v128_v44  ;;  %vm133_vm5 = vcmp.eq.f32.partialorder %v128_v44, 0.0 }
 0x186   :  { %v250_v48 = vpop.eup %249 }
 0x187   :  { %v130_v49 = vmul.f32 %v250_v48, %v128_v44 }
 0x189   :  { %v132_v52 = vsel %vm131_vm4, %v128_v44, %v130_v49 }
 0x18a   :  { %v135_v53 = vsel %vm133_vm5, %v134_v50, %v132_v52 }
 0x18b   :  { %v137_v55 = vmul.f32 0.38941833, %v135_v53 }
 0x18d   :  { %v138_v57 = vsub.f32 %v136_v54, %v137_v55 }
 0x18f   :  { %v141_v59 = vsel %vm139_vm6, %v138_v57, %v211_v58 }
 0x190   :  { %v150_v60 = vmul.f32 %v212_v51, %v141_v59 }
 0x192   :  { %v153_v62 = vadd.f32 %v152_v61, %v150_v60 }
 0x194   :  { %v154_v63 = vmul.f32 32.0, %v153_v62 }
 0x196   :  { %v155_v0 = vadd.f32 1e-10, %v154_v63 }
 0x198   :  { %v156_v1 = vsel %vm33_vm1, %v155_v0, -inf  ;;  %v168_v7 = vmul.f32 %v212_v51, %v155_v0 }
 0x199   :  { %157 = vmax.xlane.f32.xlu1 %v156_v1 }
 0x19a   :  { %v169_v8 = vsel %vm33_vm1, %v168_v7, 0.0 }
 0x226   :  { %v158_v2 = vpop.xlane.xlu1 %157 }
 0x227   :  { %v159_v3 = vsub.f32 %v155_v0, %v158_v2 }
 0x229   :  { %v160_v4 = vmul.f32 1.442695, %v159_v3 }
 0x22b   :  { %251 = vpow2.f32 %v160_v4 }
 0x235   :  { %v252_v5 = vpop.eup %251 }
 0x236   :  { %v162_v6 = vsel %vm33_vm1, %v252_v5, 0.0 }
 0x237   :  { %163 = vadd.xlane.f32.xlu1 %v162_v6 }
 0x23b   :  { %170 = vadd.xlane.f32.xlu1 %v169_v8 }
 0x2c4   :  { %v164_v9 = vpop.xlane.xlu1 %163 }
 0x2c5   :  { %253 = vlog2.f32 %v164_v9 }
 0x2c8   :  { %v171_v13 = vpop.xlane.xlu1 %170 }
 0x2cf   :  { %v254_v10 = vpop.eup %253 }
 0x2d0   :  { %v166_v11 = vmul.f32 0.6931472, %v254_v10 }
 0x2d2   :  { %v167_v12 = vadd.f32 %v166_v11, %v158_v2 }
 0x2d4   :  { %v172_v14 = vsub.f32 %v167_v12, %v171_v13 }
 0x2d6   :  { %v174_v15 = vsel %vm173_vm7, %v172_v14, 0.0 }
 0x2d7   :  { %175 = vadd.xlane.f32.xlu1 %v174_v15 }
 0x364   :  { %v176_v16 = vpop.xlane.xlu1 %175 }
 0x365   :  { %v177_v17 = vrot.slane %v176_v16, 4 }
 0x367   :  { %v178_v18 = vadd.f32 %v177_v17, %v176_v16 }
 0x369   :  { %v179_v19 = vrot.slane %v178_v18, 2 }
 0x36b   :  { %v180_v20 = vadd.f32 %v179_v19, %v178_v18 }
 0x36d   :  { %v181_v21 = vrot.slane %v180_v20, 1 }
 0x36f   :  { %v182_v22 = vadd.f32 %v181_v21, %v180_v20 }
 0x371   :  { %235 = vpush %v182_v22 }
 0x3a2   :  { %s236_s2 = spop %235 }
 0x3a3   :  { %s186_s22 = smul.f32 0.125, %s236_s2 }
 0x3a5   :  { %s187_s23 = ssub.f32 0.0, %s186_s22 }
 0x3a7   :  { %v188_v23 = vstv %s187_s23 }
 0x3a8   :  { %v189_v24 = vmul.f32 1.442695, %v188_v23 }
 0x3aa   :  { %255 = vpow2.f32 %v189_v24 }
 0x3b4   :  { %v256_v25 = vpop.eup %255 }
 0x3b5   :  { %237 = vpush %v256_v25 }
 0x3e6   :  { %s238_s24 = spop %237 }
 0x3e7   :  { %s192_s25 = ssub.f32 1.0, %s238_s24 }
 0x3e9   :  { %s193_s26 = smul.f32 %s192_s25, %s192_s25 }
 0x3eb   :  { %s194_s27 = smul.f32 %s193_s26, %s186_s22 }
 0x3ed   :  { %196 = sst [smem:[#allocation2]] %s194_s27 }
 0x3ee   :  { %266 = shalt.err (!%p263_p2)
}
 0x3ef   :  { %s273_s8 = smov [#allocation2]  }
 0x3f0   :  { %204 = dma.smem_to_hbm %s273_s8, 16, %s336_s3, [#allocation3]  }
 0x3f1   :  { %267 = dma.done.wait [#allocation3], 16  }
 0x3f2   :  { %268 = vsyncadd [#allocation3], 4294967280 }
 0x3f3   :  { %208 = sfence }
 0x3f4   :  { %209 = vsyncpa [#allocation3], 1 }

</bundles_post_ra>
